<compile_context>
chip_gen: v5e
topology: v5e:2x2
jax: 0.10.0
libtpu: 0.0.40
codegen_flags: <defaults>
</compile_context>

<pallas_src>
import numpy as np
import jax
import jax.numpy as jnp
from jax.experimental import pallas as pl
from jax.experimental.pallas import tpu as pltpu

BN_EPS = 1e-5
_HIGHEST = jax.lax.Precision.HIGHEST


# --------------------------------------------------------------------------
# Pallas kernel: the entire PosAtt2 hot path on a (C, T) pixel tile
# --------------------------------------------------------------------------
def _posatt2_kernel(x_ref, y_ref, wx_ref, wy_ref, bfc_ref, wd_ref, bd_ref, o_ref):
    # x_ref, y_ref, o_ref : (C, T)        channels on sublanes, pixels on lanes
    # wx_ref, wy_ref      : (int_ch, C)   folded fc weights (x / y halves)
    # bfc_ref             : (int_ch, 1)   folded fc bias
    # wd_ref              : (1, int_ch)   folded psi logit-difference weights
    # bd_ref              : (1, 1)        folded psi logit-difference bias
    x = x_ref[...]
    y = y_ref[...]

    # fc: Conv1x1(2C -> int_ch) + folded BN + ReLU        -> m : (int_ch, T)
    m = (jnp.dot(wx_ref[...], x, precision=_HIGHEST,
                 preferred_element_type=jnp.float32)
         + jnp.dot(wy_ref[...], y, precision=_HIGHEST,
                   preferred_element_type=jnp.float32)
         + bfc_ref[...])
    m = jnp.maximum(m, 0.0)

    # psi: Conv1x1(int_ch -> 2) + folded BN + softmax over the 2 channels,
    # computed as sigmoid of the folded logit difference    -> a0 : (1, T)
    l = (jnp.dot(wd_ref[...], m, precision=_HIGHEST,
                 preferred_element_type=jnp.float32)
         + bd_ref[...])
    a0 = 1.0 / (1.0 + jnp.exp(-l))                  # == softmax(...)[channel 0]

    # out = x * att0 + y * att1  (single lane-dense store)
    o_ref[...] = x * a0 + y * (1.0 - a0)


# --------------------------------------------------------------------------
# Helpers
# --------------------------------------------------------------------------
def fold_bn(gamma, beta, mean, var, eps=BN_EPS):
    scale = gamma / jnp.sqrt(var + eps)
    shift = beta - mean * scale
    return scale, shift


def _pick_tile(hw_pad, c, int_ch, budget_bytes=8 * 1024 * 1024, max_tile=4096):
    """Largest multiple-of-128 pixel tile that divides hw_pad and fits the
    VMEM budget (x, y, out double-buffered + the m intermediate), f32."""
    per_col = 4 * (3 * 2 * c + int_ch)          # bytes per pixel column
    t = max(128, (budget_bytes // per_col) // 128 * 128)
    t = min(t, max_tile, hw_pad)
    t = max(128, (t // 128) * 128)
    while hw_pad % t:
        t -= 128
    return t


# --------------------------------------------------------------------------
# Forward (Pallas) and pure-JAX reference
# --------------------------------------------------------------------------
def posatt2_forward(params, x_nchw, y_nchw):
    B, C, H, W = x_nchw.shape
    int_ch = params["w_fc"].shape[0]
    hw = H * W

    x = x_nchw.astype(jnp.float32).reshape(B, C, hw)
    y = y_nchw.astype(jnp.float32).reshape(B, C, hw)

    # Pad the pixel axis to a multiple of 128 (no-op for the common case).
    hw_pad = pl.cdiv(hw, 128) * 128
    if hw_pad != hw:
        pad = ((0, 0), (0, 0), (0, hw_pad - hw))
        x = jnp.pad(x, pad)
        y = jnp.pad(y, pad)

    # Fold fc BN into the conv:   m = ReLU(W_f @ [x;y] + b_f)
    s1, t1 = fold_bn(*params["bn_fc"])
    w_fc = params["w_fc"] * s1[:, None]                  # (int_ch, 2C)
    b_fc = (params["b_fc"] * s1 + t1)[:, None]           # (int_ch, 1)

    # Fold psi BN and collapse the 2-way softmax to a logit difference.
    sp, tp = fold_bn(*params["bn_psi"])
    w_psi = params["w_psi"] * sp[:, None]                # (2, int_ch)
    b_psi = params["b_psi"] * sp + tp                    # (2,)
    w_diff = (w_psi[0] - w_psi[1])[None, :]              # (1, int_ch)
    b_diff = jnp.reshape(b_psi[0] - b_psi[1], (1, 1))    # (1, 1)

    t = _pick_tile(hw_pad, C, int_ch)
    grid = (B, hw_pad // t)

    out = pl.pallas_call(
        _posatt2_kernel,
        out_shape=jax.ShapeDtypeStruct((B, C, hw_pad), jnp.float32),
        grid=grid,
        in_specs=[
            pl.BlockSpec((None, C, t), lambda b, i: (b, 0, i)),     # x
            pl.BlockSpec((None, C, t), lambda b, i: (b, 0, i)),     # y
            pl.BlockSpec((int_ch, C), lambda b, i: (0, 0)),         # Wx
            pl.BlockSpec((int_ch, C), lambda b, i: (0, 0)),         # Wy
            pl.BlockSpec((int_ch, 1), lambda b, i: (0, 0)),         # b_fc
            pl.BlockSpec((1, int_ch), lambda b, i: (0, 0)),         # w_diff
            pl.BlockSpec((1, 1), lambda b, i: (0, 0)),              # b_diff
        ],
        out_specs=pl.BlockSpec((None, C, t), lambda b, i: (b, 0, i)),
        compiler_params=pltpu.CompilerParams(
            dimension_semantics=("parallel", "parallel"),
            vmem_limit_bytes=32 * 1024 * 1024),
    )(x, y, w_fc[:, :C], w_fc[:, C:], b_fc, w_diff, b_diff)

    return out[:, :, :hw].reshape(B, C, H, W)


def posatt2_reference(params, x, y):
    """Pure-JAX mirror of the PyTorch module (inference-mode BN)."""
    s1, t1 = fold_bn(*params["bn_fc"])
    sp, tp = fold_bn(*params["bn_psi"])
    z = jnp.concatenate([x, y], axis=1)                              # (B,2C,H,W)
    m = (jnp.einsum('oc,bchw->bohw', params["w_fc"], z, precision=_HIGHEST)
         + params["b_fc"][None, :, None, None])
    m = jax.nn.relu(m * s1[None, :, None, None] + t1[None, :, None, None])
    l = (jnp.einsum('oc,bchw->bohw', params["w_psi"], m, precision=_HIGHEST)
         + params["b_psi"][None, :, None, None])
    l = l * sp[None, :, None, None] + tp[None, :, None, None]
    att = jax.nn.softmax(l, axis=1)
    return x * att[:, 0:1] + y * att[:, 1:2]


# --------------------------------------------------------------------------
# Deterministic synthetic parameters (shapes implied by PosAtt2.__init__)
# --------------------------------------------------------------------------
def make_params(key, in_ch, r=4):
    int_ch = max(in_ch // r, 32)
    ks = jax.random.split(key, 6)

    def w(k, shape, scale=0.3):
        return scale * jax.random.normal(k, shape, jnp.float32)

    def bn(k, c):
        k1, k2, k3, k4 = jax.random.split(k, 4)
        gamma = 1.0 + 0.1 * jax.random.normal(k1, (c,), jnp.float32)
        beta = 0.1 * jax.random.normal(k2, (c,), jnp.float32)
        mean = 0.1 * jax.random.normal(k3, (c,), jnp.float32)
        var = 0.5 + jax.random.uniform(k4, (c,), jnp.float32)
        return (gamma, beta, mean, var)

    return {
        # fc: Conv2d(2*in_ch, int_ch, 1, bias=True) + BN + ReLU
        "w_fc": w(ks[0], (int_ch, 2 * in_ch)),
        "b_fc": w(ks[1], (int_ch,)),
        "bn_fc": bn(ks[2], int_ch),
        # psi: Conv2d(int_ch, 2, 1, bias=True) + BN (+ softmax over channels)
        "w_psi": w(ks[3], (2, int_ch)),
        "b_psi": w(ks[4], (2,)),
        "bn_psi": bn(ks[5], 2),
    }


if __name__ == "__main__":
    B, C, H, W = 2, 4, 16, 16   # in_ch = 4  ->  int_ch = max(4 // 4, 32) = 32
    key = jax.random.PRNGKey(0)
    kx, ky, kp = jax.random.split(key, 3)
    x = jax.random.normal(kx, (B, C, H, W), jnp.float32)
    y = jax.random.normal(ky, (B, C, H, W), jnp.float32)
    params = make_params(kp, C)

    out = jax.jit(posatt2_forward)(params, x, y)
    out = jax.block_until_ready(out)

    ref = posatt2_reference(params, x, y)
    assert out.shape == (B, C, H, W)
    assert bool(jnp.all(jnp.isfinite(out)))
    np.testing.assert_allclose(np.asarray(out), np.asarray(ref),
                               rtol=1e-3, atol=1e-3)
    print("KERNEL_OK")
</pallas_src>

<mosaic_0001>
module attributes {stable_mosaic.version = 11 : i64} {
  func.func @_posatt2_kernel(%arg0: i32, %arg1: i32, %arg2: memref<1x4x256xf32, #tpu.memory_space<vmem>>, %arg3: memref<1x4x256xf32, #tpu.memory_space<vmem>>, %arg4: memref<32x4xf32, #tpu.memory_space<vmem>>, %arg5: memref<32x4xf32, #tpu.memory_space<vmem>>, %arg6: memref<32x1xf32, #tpu.memory_space<vmem>>, %arg7: memref<1x32xf32, #tpu.memory_space<vmem>>, %arg8: memref<1x1xf32, #tpu.memory_space<vmem>>, %arg9: memref<1x4x256xf32, #tpu.memory_space<vmem>>) attributes {dimension_semantics = [#tpu.dimension_semantics<parallel>, #tpu.dimension_semantics<parallel>], iteration_bounds = array<i64: 2, 1>, scalar_prefetch = 0 : i64, scratch_operands = 0 : i64, tpu.core_type = #tpu.core_type<tc>, window_params = [{transform_indices = @transform_0, window_bounds = array<i64: 1, 4, 256>}, {transform_indices = @transform_1, window_bounds = array<i64: 1, 4, 256>}, {pipeline_mode = #tpu.pipeline_mode<synchronous>, transform_indices = @transform_2, window_bounds = array<i64: 32, 4>}, {pipeline_mode = #tpu.pipeline_mode<synchronous>, transform_indices = @transform_3, window_bounds = array<i64: 32, 4>}, {pipeline_mode = #tpu.pipeline_mode<synchronous>, transform_indices = @transform_4, window_bounds = array<i64: 32, 1>}, {pipeline_mode = #tpu.pipeline_mode<synchronous>, transform_indices = @transform_5, window_bounds = array<i64: 1, 32>}, {pipeline_mode = #tpu.pipeline_mode<synchronous>, transform_indices = @transform_6, window_bounds = array<i64: 1, 1>}, {transform_indices = @transform_7, window_bounds = array<i64: 1, 4, 256>}]} {
    %c0 = arith.constant 0 : index
    %c0_0 = arith.constant 0 : index
    %c0_1 = arith.constant 0 : index
    %0 = vector.load %arg2[%c0, %c0_0, %c0_1] : memref<1x4x256xf32, #tpu.memory_space<vmem>>, vector<1x4x256xf32>
    %1 = vector.shape_cast %0 : vector<1x4x256xf32> to vector<4x256xf32>
    %c0_2 = arith.constant 0 : index
    %c0_3 = arith.constant 0 : index
    %c0_4 = arith.constant 0 : index
    %2 = vector.load %arg3[%c0_2, %c0_3, %c0_4] : memref<1x4x256xf32, #tpu.memory_space<vmem>>, vector<1x4x256xf32>
    %3 = vector.shape_cast %2 : vector<1x4x256xf32> to vector<4x256xf32>
    %c0_5 = arith.constant 0 : index
    %c0_6 = arith.constant 0 : index
    %4 = vector.load %arg4[%c0_5, %c0_6] : memref<32x4xf32, #tpu.memory_space<vmem>>, vector<32x4xf32>
    %cst = arith.constant dense<0.000000e+00> : vector<32x256xf32>
    %5 = tpu.matmul %4, %1, %cst {dimension_numbers = #tpu.dot_dimension_numbers<[1], [0], [0], [1], [0, 0, 1, 1], [], []>, precision = #tpu.contract_precision<fp32>} : vector<32x4xf32>, vector<4x256xf32>, vector<32x256xf32> -> vector<32x256xf32>
    %c0_7 = arith.constant 0 : index
    %c0_8 = arith.constant 0 : index
    %6 = vector.load %arg5[%c0_7, %c0_8] : memref<32x4xf32, #tpu.memory_space<vmem>>, vector<32x4xf32>
    %cst_9 = arith.constant dense<0.000000e+00> : vector<32x256xf32>
    %7 = tpu.matmul %6, %3, %cst_9 {dimension_numbers = #tpu.dot_dimension_numbers<[1], [0], [0], [1], [0, 0, 1, 1], [], []>, precision = #tpu.contract_precision<fp32>} : vector<32x4xf32>, vector<4x256xf32>, vector<32x256xf32> -> vector<32x256xf32>
    %8 = arith.addf %5, %7 : vector<32x256xf32>
    %c0_10 = arith.constant 0 : index
    %c0_11 = arith.constant 0 : index
    %9 = vector.load %arg6[%c0_10, %c0_11] : memref<32x1xf32, #tpu.memory_space<vmem>>, vector<32x1xf32>
    %10 = vector.broadcast %9 : vector<32x1xf32> to vector<32x256xf32>
    %11 = arith.addf %8, %10 : vector<32x256xf32>
    %cst_12 = arith.constant 0.000000e+00 : f32
    %12 = vector.broadcast %cst_12 : f32 to vector<32x256xf32>
    %13 = arith.maximumf %11, %12 : vector<32x256xf32>
    %c0_13 = arith.constant 0 : index
    %c0_14 = arith.constant 0 : index
    %14 = vector.load %arg7[%c0_13, %c0_14] : memref<1x32xf32, #tpu.memory_space<vmem>>, vector<1x32xf32>
    %cst_15 = arith.constant dense<0.000000e+00> : vector<1x256xf32>
    %15 = tpu.matmul %14, %13, %cst_15 {dimension_numbers = #tpu.dot_dimension_numbers<[1], [0], [0], [1], [0, 0, 1, 1], [], []>, precision = #tpu.contract_precision<fp32>} : vector<1x32xf32>, vector<32x256xf32>, vector<1x256xf32> -> vector<1x256xf32>
    %c0_16 = arith.constant 0 : index
    %c0_17 = arith.constant 0 : index
    %16 = vector.load %arg8[%c0_16, %c0_17] : memref<1x1xf32, #tpu.memory_space<vmem>>, vector<1x1xf32>
    %17 = vector.broadcast %16 : vector<1x1xf32> to vector<1x256xf32>
    %18 = arith.addf %15, %17 : vector<1x256xf32>
    %cst_18 = arith.constant 0.000000e+00 : f32
    %19 = vector.broadcast %cst_18 : f32 to vector<1x256xf32>
    %20 = arith.subf %19, %18 : vector<1x256xf32>
    %21 = math.exp %20 : vector<1x256xf32>
    %cst_19 = arith.constant 1.000000e+00 : f32
    %22 = vector.broadcast %cst_19 : f32 to vector<1x256xf32>
    %23 = arith.addf %22, %21 : vector<1x256xf32>
    %cst_20 = arith.constant 1.000000e+00 : f32
    %24 = vector.broadcast %cst_20 : f32 to vector<1x256xf32>
    %25 = arith.divf %24, %23 : vector<1x256xf32>
    %26 = vector.broadcast %25 : vector<1x256xf32> to vector<4x256xf32>
    %27 = arith.mulf %1, %26 : vector<4x256xf32>
    %cst_21 = arith.constant 1.000000e+00 : f32
    %28 = vector.broadcast %cst_21 : f32 to vector<1x256xf32>
    %29 = arith.subf %28, %25 : vector<1x256xf32>
    %30 = vector.broadcast %29 : vector<1x256xf32> to vector<4x256xf32>
    %31 = arith.mulf %3, %30 : vector<4x256xf32>
    %32 = arith.addf %27, %31 : vector<4x256xf32>
    %c0_22 = arith.constant 0 : index
    %c0_23 = arith.constant 0 : index
    %c0_24 = arith.constant 0 : index
    %33 = vector.load %arg9[%c0_22, %c0_23, %c0_24] : memref<1x4x256xf32, #tpu.memory_space<vmem>>, vector<1x4x256xf32>
    %34 = vector.shape_cast %33 : vector<1x4x256xf32> to vector<4x256xf32>
    %35 = vector.shape_cast %32 : vector<4x256xf32> to vector<1x4x256xf32>
    tpu.vector_store %arg9[%c0_22, %c0_23, %c0_24], %35 {strides = array<i32>} : memref<1x4x256xf32, #tpu.memory_space<vmem>>, vector<1x4x256xf32>,
    return
  }
  func.func @transform_0(%arg0: i32, %arg1: i32) -> (i32, i32, i32) {
    %c0_i32 = arith.constant 0 : i32
    %c0_i32_0 = arith.constant 0 : i32
    return %arg0, %c0_i32, %arg1 : i32, i32, i32
  }
  func.func @transform_1(%arg0: i32, %arg1: i32) -> (i32, i32, i32) {
    %c0_i32 = arith.constant 0 : i32
    %c0_i32_0 = arith.constant 0 : i32
    return %arg0, %c0_i32, %arg1 : i32, i32, i32
  }
  func.func @transform_2(%arg0: i32, %arg1: i32) -> (i32, i32) {
    %c0_i32 = arith.constant 0 : i32
    %c0_i32_0 = arith.constant 0 : i32
    %c0_i32_1 = arith.constant 0 : i32
    return %c0_i32, %c0_i32_0 : i32, i32
  }
  func.func @transform_3(%arg0: i32, %arg1: i32) -> (i32, i32) {
    %c0_i32 = arith.constant 0 : i32
    %c0_i32_0 = arith.constant 0 : i32
    %c0_i32_1 = arith.constant 0 : i32
    return %c0_i32, %c0_i32_0 : i32, i32
  }
  func.func @transform_4(%arg0: i32, %arg1: i32) -> (i32, i32) {
    %c0_i32 = arith.constant 0 : i32
    %c0_i32_0 = arith.constant 0 : i32
    %c0_i32_1 = arith.constant 0 : i32
    return %c0_i32, %c0_i32_0 : i32, i32
  }
  func.func @transform_5(%arg0: i32, %arg1: i32) -> (i32, i32) {
    %c0_i32 = arith.constant 0 : i32
    %c0_i32_0 = arith.constant 0 : i32
    %c0_i32_1 = arith.constant 0 : i32
    return %c0_i32, %c0_i32_0 : i32, i32
  }
  func.func @transform_6(%arg0: i32, %arg1: i32) -> (i32, i32) {
    %c0_i32 = arith.constant 0 : i32
    %c0_i32_0 = arith.constant 0 : i32
    %c0_i32_1 = arith.constant 0 : i32
    return %c0_i32, %c0_i32_0 : i32, i32
  }
  func.func @transform_7(%arg0: i32, %arg1: i32) -> (i32, i32, i32) {
    %c0_i32 = arith.constant 0 : i32
    %c0_i32_0 = arith.constant 0 : i32
    return %arg0, %c0_i32, %arg1 : i32, i32, i32
  }
}

</mosaic_0001>

<bundles_post_ra>
// kernel: posatt2_forward.1
= control target key start
LH: loop header
LB: loop body
LE: loop exit
PB: predicated region body
PF: predicated region fallthrough
CT: control target
= control target key end

     0   :  { %s2069_s26 = smov 0   ;;  %s2071_s27 = smov 0   ;;  %s2437_s0 = inlined_call_operand.vmem [shape: f32[2,4,256], index: 0, kind: input, shape index: {}]   ;;  %s2438_s1 = inlined_call_operand.vmem [shape: f32[2,4,256], index: 1, kind: input, shape index: {}]   ;;  %s2439_s2 = inlined_call_operand.vmem [shape: f32[32,4], index: 2, kind: input, shape index: {}]   ;;  %s2440_s3 = inlined_call_operand.vmem [shape: f32[32,4], index: 3, kind: input, shape index: {}]   ;;  %s2441_s4 = inlined_call_operand.vmem [shape: f32[32,1], index: 4, kind: input, shape index: {}]   ;;  %s2442_s5 = inlined_call_operand.vmem [shape: f32[1,32], index: 5, kind: input, shape index: {}]   ;;  %s2443_s6 = inlined_call_operand.<no memory space> [shape: f32[1,1], index: 6, kind: input, shape index: {}]   ;;  %s2444_s7 = inlined_call_operand.vmem [shape: f32[2,4,256], index: 7, kind: output, shape index: {}]  }
   0x1   :  { %v12_v0 = vstv %s2443_s6  ;;  %s2073_s28 = smov 0  }
   0x2   :  { %13 = vst [vmem:[#allocation2] sm:$0x1] %v12_v0 }
   0x3 LB: > { %s31_s6 = sadd.s32 1, %s2019_s27  ;;  %p1953_p0 = scmp.ge.s32.totalorder %s2023_s28, 1  ;;  %s2023_s28 = sphi %s2073_s28, %s19_s28   ;;  %s2019_s27 = sphi %s2071_s27, %s2446_s27   ;;  %s2015_s26 = sphi %s2069_s26, %s2445_s26  }
   0x4   : > { %p33_p1 = scmp.ge.s32.totalorder %s31_s6, 2  ;;  %p277_p2 = scmp.lt.s32.totalorder %s2023_s28, 3 }
   0x6   : > { %s2448_s6 = smov (%p33_p1, %s31_s6), 0  ;;  %p278_p3 = pnand %p1953_p0, %p277_p2 }
   0x7   : > { %p327_p4 = scmp.lt.s32.totalorder (!%p278_p3), %s2015_s26, 1 }
   0x8   : > { %281 = sbr.rel (%p278_p3) target bundleno = 559 (0x22f), region = 48 }
   0xd   : > { %v362_v1 = vld [vmem:[%s2440_s3] sm:$0xff]  ;;  %vm370_vm0 = vcmask 31744   ;;  %v363_v3 = vld [vmem:[%s2440_s3 + $0x8] sm:$0xff]  ;;  %s2450_s26 = smov (!%p327_p4, %s2015_s26), 1  ;;  %v364_v10 = vld [vmem:[%s2440_s3 + $0x10] sm:$0xff]  ;;  %vm383_vm1 = vcmask 1043456  }
   0xe   : > { %v372_v2 = vsel %vm370_vm0, %v362_v1, 0  ;;  %s2096_s10 = sshll.u32 %s2450_s26, 3  ;;  %v375_v6 = vsel %vm370_vm0, %v363_v3, 0  ;;  %v378_v11 = vsel %vm370_vm0, %v364_v10, 0  ;;  %v365_v24 = vld [vmem:[%s2440_s3 + $0x18] sm:$0xff]  ;;  %v358_v55 = vld [vmem:[%s2439_s2] sm:$0xff] }
   0xf   : > { %v2094_v4 = vand.u32 4294901760, %v372_v2  ;;  %s344_s13 = scalar_lea.vmem %s2438_s1, %s2096_s10  ;;  %v2112_v9 = vand.u32 4294901760, %v375_v6  ;;  %s334_s18 = scalar_lea.vmem %s2437_s0, %s2096_s10  ;;  %v2129_v15 = vand.u32 4294901760, %v378_v11  ;;  %v381_v31 = vsel %vm370_vm0, %v365_v24, 0  ;;  %v359_v62 = vld [vmem:[%s2439_s2 + $0x8] sm:$0xff]  ;;  %v360_v3 = vld [vmem:[%s2439_s2 + $0x10] sm:$0xff] }
  0x10   : > { %v2106_v7 = vld [vmem:[%s344_s13] sm:$0xff]  ;;  %v2151_v36 = vand.u32 4294901760, %v381_v31  ;;  %v871_v58 = vsel %vm370_vm0, %v358_v55, 0  ;;  %v874_v0 = vsel %vm370_vm0, %v359_v62, 0  ;;  %vm1412_vm2 = vcmask 261120   ;;  %s354_s21 = scalar_lea.vmem %s2444_s7, %s2096_s10 }
  0x11   : > { %v2099_v5 = vsub.f32 %v372_v2, %v2094_v4  ;;  %367 = vst [vmem:[#allocation1] ss:$2 sm:$0xff] %v2106_v7  ;;  %v2125_v13 = vsub.f32 %v375_v6, %v2112_v9  ;;  %v2127_v14 = vld [vmem:[%s334_s18] sm:$0xff]  ;;  %v2144_v28 = vsub.f32 %v378_v11, %v2129_v15  ;;  %v2198_v60 = vand.u32 4294901760, %v871_v58  ;;  %v361_v11 = vld [vmem:[%s2439_s2 + $0x18] sm:$0xff] }
  0x12   : > { %v2157_v40 = vsub.f32 %v381_v31, %v2151_v36  ;;  %v2214_v2 = vand.u32 4294901760, %v874_v0  ;;  %v877_v6 = vsel %vm370_vm0, %v360_v3, 0 }
  0x13   : > { %v2110_v8 = vand.u32 4294901760, %v2099_v5  ;;  %v2135_v21 = vand.u32 4294901760, %v2125_v13  ;;  %v2149_v35 = vand.u32 4294901760, %v2144_v28  ;;  %v2206_v63 = vsub.f32 %v871_v58, %v2198_v60 }
  0x14   : > { %v2162_v42 = vand.u32 4294901760, %v2157_v40  ;;  %v2232_v10 = vand.u32 4294901760, %v877_v6 }
  0x15   : > { %v408_v12 = vsub.f32 %v2099_v5, %v2110_v8  ;;  %v416_v27 = vsub.f32 %v2125_v13, %v2135_v21  ;;  %v424_v39 = vsub.f32 %v2144_v28, %v2149_v35  ;;  %v2212_v1 = vand.u32 4294901760, %v2206_v63 }
  0x16   : > { %v432_v43 = vsub.f32 %v2157_v40, %v2162_v42 }
  0x17   : > { %v409_v19 = vand.u32 4294901760, %v408_v12  ;;  %v417_v34 = vand.u32 4294901760, %v416_v27  ;;  %v425_v41 = vand.u32 4294901760, %v424_v39 }
  0x18   : > { %v368_v16 = vld.sshfl [vmem:[#allocation1] sm:$0xff pattern:$0x75316420]  ;;  %v369_v17 = vld.sshfl [vmem:[#allocation1 + $0x8] sm:$0xff pattern:$0x75316420] }
  0x19   : > { %v384_v18 = vsel %vm383_vm1, %v368_v16, 0  ;;  %v386_v20 = vsel %vm383_vm1, %v369_v17, 0  ;;  %867 = vst [vmem:[#allocation1] ss:$2 sm:$0xff] %v2127_v14  ;;  %v433_v44 = vand.u32 4294901760, %v432_v43 }
  0x1a   : > { %v403_v22 = vand.u32 4294901760, %v384_v18  ;;  %v642_v23 = vand.u32 4294901760, %v386_v20 }
  0x1c   : > { %404 = vmatpush.msra.mxu0 %v403_v22  ;;  %v454_v25 = vsub.f32 %v384_v18, %v403_v22  ;;  %531 = vmatpush.msra.mxu3 %v403_v22  ;;  %v693_v26 = vsub.f32 %v386_v20, %v642_v23 }
  0x1d   : > { %410 = vmatmul.f32.vlgmr.msra.gmra.mxu0 %v409_v19  ;;  %535 = vmatmul.f32.vlgmr.msra.gmra.mxu3 %v2110_v8 }
  0x1e   : > { %493 = vmatpush.msra.mxu2 %v454_v25  ;;  %v455_v29 = vand.u32 4294901760, %v454_v25  ;;  %v694_v30 = vand.u32 4294901760, %v693_v26 }
  0x1f   : > { %496 = vmatmul.f32.vlgmr.msra.gmra.mxu2 %v2099_v5 }
  0x20   : > { %643 = vmatpush.msrb.mxu2 %v642_v23  ;;  %v456_v32 = vsub.f32 %v454_v25, %v455_v29  ;;  %575 = vmatpush.msrb.mxu0 %v455_v29  ;;  %v695_v33 = vsub.f32 %v693_v26, %v694_v30  ;;  %v868_v45 = vld.sshfl [vmem:[#allocation1] sm:$0xff pattern:$0x75316420]  ;;  %v869_v52 = vld.sshfl [vmem:[#allocation1 + $0x8] sm:$0xff pattern:$0x75316420] }
  0x21   : > { %v882_v46 = vsel %vm383_vm1, %v868_v45, 0  ;;  %v884_v53 = vsel %vm383_vm1, %v869_v52, 0 }
  0x22   : > { %814 = vmatpush.msra.mxu2 %v694_v30  ;;  %732 = vmatpush.msra.mxu0 %v693_v26  ;;  %v457_v37 = vand.u32 4294901760, %v456_v32  ;;  %v696_v38 = vand.u32 4294901760, %v695_v33  ;;  %v901_v47 = vand.u32 4294901760, %v882_v46  ;;  %v1140_v54 = vand.u32 4294901760, %v884_v53  ;;  %v1364_v26 = vld [vmem:[%s2441_s4] sm:$0xff]  ;;  %v1366_v30 = vld [vmem:[%s2441_s4 + $0x10] sm:$0xff] }
  0x24   : > { %458 = vmatpush.msra.mxu1 %v457_v37  ;;  %697 = vmatpush.msrb.mxu3 %v696_v38  ;;  %v952_v48 = vsub.f32 %v882_v46, %v901_v47  ;;  %v1191_v56 = vsub.f32 %v884_v53, %v1140_v54 }
  0x25   : > { %418 = vmatmul.f32.gmra.mxu0 %v417_v34  ;;  %460 = vmatmul.f32.vlgmr.msra.gmra.mxu1 %v2094_v4 }
  0x26   : > { %609 = vmatpush.msrb.mxu1 %v403_v22  ;;  %541 = vmatmul.f32.gmra.mxu3 %v2135_v21  ;;  %v953_v49 = vand.u32 4294901760, %v952_v48  ;;  %v1192_v57 = vand.u32 4294901760, %v1191_v56  ;;  %v2025_v22 = vmov 0  }
  0x27   : > { %501 = vmatmul.f32.gmra.mxu2 %v2125_v13  ;;  %848 = vmatpush.msra.mxu3 %v642_v23 }
  0x28   : > { %770 = vmatpush.msra.mxu1 %v642_v23  ;;  %v954_v50 = vsub.f32 %v952_v48, %v953_v49  ;;  %v1193_v59 = vsub.f32 %v1191_v56, %v1192_v57  ;;  %1991 = vset.pattern.permute.xlu1 %v2025_v22 }
  0x29   : > { %1990 = vset.pattern.permute.xlu0 %v2025_v22  ;;  %1992 = vset.pattern.permute.xlu2 %v2025_v22 }
  0x2a   : > { %v955_v51 = vand.u32 4294901760, %v954_v50  ;;  %v1194_v61 = vand.u32 4294901760, %v1193_v59 }
  0x2d   : > { %426 = vmatmul.f32.gmra.mxu0 %v425_v41  ;;  %464 = vmatmul.f32.gmra.mxu1 %v2112_v9 }
  0x2e   : > { %547 = vmatmul.f32.gmra.mxu3 %v2149_v35 }
  0x2f   : > { %506 = vmatmul.f32.gmra.mxu2 %v2144_v28 }
  0x35   : > { %434 = vmatmul.f32.gmra.mxu0 %v433_v44  ;;  %468 = vmatmul.f32.gmra.mxu1 %v2129_v15 }
  0x36   : > { %553 = vmatmul.f32.gmra.mxu3 %v2162_v42 }
  0x37   : > { %511 = vmatmul.f32.gmra.mxu2 %v2157_v40 }
  0x3d   : > { %472 = vmatmul.f32.gmra.mxu1 %v2151_v36  ;;  %577 = vmatmul.f32.vlgmr.msrb.gmra.mxu0 %v2094_v4 }
  0x3e   : > { %699 = vmatmul.f32.vlgmr.msrb.gmra.mxu3 %v2094_v4  ;;  %902 = vmatpush.msrb.mxu0 %v901_v47 }
  0x3f   : > { %649 = vmatmul.f32.vlgmr.msrb.gmra.mxu2 %v409_v19  ;;  %1029 = vmatpush.msrb.mxu3 %v901_v47 }
  0x40   : > { %991 = vmatpush.msrb.mxu2 %v952_v48 }
  0x45   : > { %581 = vmatmul.f32.gmra.mxu0 %v2112_v9  ;;  %611 = vmatmul.f32.vlgmr.msrb.gmra.mxu1 %v2094_v4 }
  0x46   : > { %703 = vmatmul.f32.gmra.mxu3 %v2112_v9  ;;  %956 = vmatpush.msrb.mxu1 %v955_v51 }
  0x47   : > { %657 = vmatmul.f32.gmra.mxu2 %v417_v34 }
  0x4d   : > { %585 = vmatmul.f32.gmra.mxu0 %v2129_v15  ;;  %615 = vmatmul.f32.gmra.mxu1 %v2112_v9 }
  0x4e   : > { %707 = vmatmul.f32.gmra.mxu3 %v2129_v15 }
  0x4f   : > { %665 = vmatmul.f32.gmra.mxu2 %v425_v41 }
  0x55   : > { %589 = vmatmul.f32.gmra.mxu0 %v2151_v36  ;;  %619 = vmatmul.f32.gmra.mxu1 %v2129_v15 }
  0x56   : > { %711 = vmatmul.f32.gmra.mxu3 %v2151_v36 }
  0x57   : > { %673 = vmatmul.f32.gmra.mxu2 %v433_v44 }
  0x5d   : > { %623 = vmatmul.f32.gmra.mxu1 %v2151_v36  ;;  %735 = vmatmul.f32.vlgmr.msra.gmra.mxu0 %v2099_v5  ;;  %v2224_v5 = vsub.f32 %v874_v0, %v2214_v2 }
  0x5e   : > { %850 = vmatmul.f32.vlgmr.msra.gmra.mxu3 %v2094_v4  ;;  %1073 = vmatpush.msra.mxu0 %v953_v49 }
  0x5f   : > { %816 = vmatmul.f32.vlgmr.msra.gmra.mxu2 %v2094_v4  ;;  %1195 = vmatpush.msra.mxu3 %v1194_v61  ;;  %v906_v4 = vsub.f32 %v2206_v63, %v2212_v1 }
  0x60   : > { %1141 = vmatpush.msra.mxu2 %v1140_v54 }
  0x65   : > { %740 = vmatmul.f32.gmra.mxu0 %v2125_v13  ;;  %774 = vmatmul.f32.vlgmr.msra.gmra.mxu1 %v2110_v8  ;;  %v907_v8 = vand.u32 4294901760, %v906_v4  ;;  %v2241_v13 = vsub.f32 %v877_v6, %v2232_v10 }
  0x66   : > { %854 = vmatmul.f32.gmra.mxu3 %v2112_v9  ;;  %1107 = vmatpush.msra.mxu1 %v901_v47 }
  0x67   : > { %820 = vmatmul.f32.gmra.mxu2 %v2112_v9  ;;  %v2230_v9 = vand.u32 4294901760, %v2224_v5  ;;  %v2247_v17 = vand.u32 4294901760, %v2241_v13 }
  0x69   : > { %v914_v12 = vsub.f32 %v2224_v5, %v2230_v9  ;;  %v922_v19 = vsub.f32 %v2241_v13, %v2247_v17 }
  0x6b   : > { %v915_v16 = vand.u32 4294901760, %v914_v12  ;;  %v923_v23 = vand.u32 4294901760, %v922_v19 }
  0x6d   : > { %745 = vmatmul.f32.gmra.mxu0 %v2144_v28  ;;  %780 = vmatmul.f32.gmra.mxu1 %v2135_v21  ;;  %v1365_v21 = vld [vmem:[%s2441_s4 + $0x8] sm:$0xff]  ;;  %v1367_v28 = vld [vmem:[%s2441_s4 + $0x18] sm:$0xff] }
  0x6e   : > { %858 = vmatmul.f32.gmra.mxu3 %v2129_v15  ;;  %1375 = vperm.xlu1 %1991, %v1365_v21  }
  0x6f   : > { %824 = vmatmul.f32.gmra.mxu2 %v2129_v15  ;;  %v880_v15 = vsel %vm370_vm0, %v361_v11, 0  ;;  %1385 = vperm.xlu0 %1990, %v1367_v28  }
  0x70   : > { %v2249_v18 = vand.u32 4294901760, %v880_v15 }
  0x72   : > { %v2255_v20 = vsub.f32 %v880_v15, %v2249_v18 }
  0x74   : > { %v2263_v24 = vand.u32 4294901760, %v2255_v20 }
  0x75   : > { %750 = vmatmul.f32.gmra.mxu0 %v2157_v40  ;;  %786 = vmatmul.f32.gmra.mxu1 %v2149_v35 }
  0x76   : > { %862 = vmatmul.f32.gmra.mxu3 %v2151_v36  ;;  %v930_v25 = vsub.f32 %v2255_v20, %v2263_v24  ;;  %1370 = vperm.xlu1 %1991, %v1364_v26  }
  0x77   : > { %828 = vmatmul.f32.gmra.mxu2 %v2151_v36  ;;  %1380 = vperm.xlu0 %1990, %v1366_v30  }
  0x78   : > { %v931_v27 = vand.u32 4294901760, %v930_v25 }
  0x7d   : > { %792 = vmatmul.f32.gmra.mxu1 %v2162_v42  ;;  %908 = vmatmul.f32.vlgmr.msrb.gmra.mxu0 %v907_v8 }
  0x7e   : > { %1033 = vmatmul.f32.vlgmr.msrb.gmra.mxu3 %v2212_v1  ;;  %1230 = vmatpush.msrb.mxu0 %v1191_v56 }
  0x7f   : > { %994 = vmatmul.f32.vlgmr.msrb.gmra.mxu2 %v2206_v63  ;;  %1346 = vmatpush.msrb.mxu3 %v1140_v54 }
  0x80   : > { %1312 = vmatpush.msrb.mxu2 %v1192_v57 }
  0x85   : > { %916 = vmatmul.f32.gmra.mxu0 %v915_v16  ;;  %958 = vmatmul.f32.vlgmr.msrb.gmra.mxu1 %v2198_v60 }
  0x86   : > { %1039 = vmatmul.f32.gmra.mxu3 %v2230_v9  ;;  %1268 = vmatpush.msrb.mxu1 %v1140_v54 }
  0x87   : > { %999 = vmatmul.f32.gmra.mxu2 %v2224_v5 }
  0x8d   : > { %924 = vmatmul.f32.gmra.mxu0 %v923_v23  ;;  %962 = vmatmul.f32.gmra.mxu1 %v2214_v2 }
  0x8e   : > { %1045 = vmatmul.f32.gmra.mxu3 %v2247_v17 }
  0x8f   : > { %1004 = vmatmul.f32.gmra.mxu2 %v2241_v13 }
  0x95   : > { %932 = vmatmul.f32.gmra.mxu0 %v931_v27  ;;  %966 = vmatmul.f32.gmra.mxu1 %v2232_v10 }
  0x96   : > { %1051 = vmatmul.f32.gmra.mxu3 %v2263_v24 }
  0x97   : > { %1009 = vmatmul.f32.gmra.mxu2 %v2255_v20 }
  0x9a   : > { %v411_v29 = vpop.f32.mrf.mxu0 }
  0x9d   : > { %970 = vmatmul.f32.gmra.mxu1 %v2249_v18  ;;  %1075 = vmatmul.f32.vlgmr.msra.gmra.mxu0 %v2198_v60 }
  0x9e   : > { %1197 = vmatmul.f32.vlgmr.msra.gmra.mxu3 %v2198_v60 }
  0x9f   : > { %1147 = vmatmul.f32.vlgmr.msra.gmra.mxu2 %v907_v8 }
  0xa0   : > { %v536_v31 = vpop.f32.mrf.mxu3 }
  0xa2   : > { %v419_v32 = vpop.f32.mrf.mxu0  ;;  %v461_v33 = vpop.f32.mrf.mxu1 }
  0xa3   : > { %v497_v34 = vpop.f32.mrf.mxu2  ;;  %v462_v43 = vadd.f32 %v461_v33, %v411_v29 }
  0xa5   : > { %1079 = vmatmul.f32.gmra.mxu0 %v2214_v2  ;;  %1109 = vmatmul.f32.vlgmr.msra.gmra.mxu1 %v2198_v60  ;;  %v498_v47 = vadd.f32 %v497_v34, %v462_v43 }
  0xa6   : > { %1201 = vmatmul.f32.gmra.mxu3 %v2214_v2 }
  0xa7   : > { %1155 = vmatmul.f32.gmra.mxu2 %v915_v16  ;;  %v537_v51 = vadd.f32 %v536_v31, %v498_v47 }
  0xa9   : > { %v542_v35 = vpop.f32.mrf.mxu3 }
  0xaa   : > { %v427_v36 = vpop.f32.mrf.mxu0  ;;  %v465_v37 = vpop.f32.mrf.mxu1 }
  0xab   : > { %v502_v38 = vpop.f32.mrf.mxu2  ;;  %v466_v52 = vadd.f32 %v465_v37, %v419_v32 }
  0xad   : > { %1083 = vmatmul.f32.gmra.mxu0 %v2232_v10  ;;  %1113 = vmatmul.f32.gmra.mxu1 %v2214_v2  ;;  %v503_v58 = vadd.f32 %v502_v38, %v466_v52 }
  0xae   : > { %1205 = vmatmul.f32.gmra.mxu3 %v2232_v10 }
  0xaf   : > { %1163 = vmatmul.f32.gmra.mxu2 %v923_v23 }
  0xb1   : > { %v548_v39 = vpop.f32.mrf.mxu3 }
  0xb2   : > { %v435_v40 = vpop.f32.mrf.mxu0  ;;  %v469_v41 = vpop.f32.mrf.mxu1 }
  0xb3   : > { %v507_v42 = vpop.f32.mrf.mxu2  ;;  %v470_v0 = vadd.f32 %v469_v41, %v427_v36 }
  0xb5   : > { %1087 = vmatmul.f32.gmra.mxu0 %v2249_v18  ;;  %1117 = vmatmul.f32.gmra.mxu1 %v2232_v10  ;;  %v508_v8 = vadd.f32 %v507_v42, %v470_v0 }
  0xb6   : > { %1209 = vmatmul.f32.gmra.mxu3 %v2249_v18 }
  0xb7   : > { %1171 = vmatmul.f32.gmra.mxu2 %v931_v27 }
  0xb9   : > { %v554_v44 = vpop.f32.mrf.mxu3 }
  0xba   : > { %v473_v45 = vpop.f32.mrf.mxu1  ;;  %v578_v46 = vpop.f32.mrf.mxu0 }
  0xbb   : > { %v474_v48 = vadd.f32 %v473_v45, %v435_v40  ;;  %v512_v49 = vpop.f32.mrf.mxu2  ;;  %v579_v54 = vadd.f32 %v578_v46, %v537_v51 }
  0xbd   : > { %v513_v50 = vadd.f32 %v512_v49, %v474_v48  ;;  %1121 = vmatmul.f32.gmra.mxu1 %v2249_v18  ;;  %1233 = vmatmul.f32.vlgmr.msrb.gmra.mxu0 %v2206_v63  ;;  %v543_v63 = vadd.f32 %v542_v35, %v503_v58 }
  0xbe   : > { %1348 = vmatmul.f32.vlgmr.msrb.gmra.mxu3 %v2198_v60 }
  0xbf   : > { %v555_v53 = vadd.f32 %v554_v44, %v513_v50  ;;  %1314 = vmatmul.f32.vlgmr.msrb.gmra.mxu2 %v2198_v60 }
  0xc1   : > { %v700_v55 = vpop.f32.mrf.mxu3 }
  0xc2   : > { %v582_v56 = vpop.f32.mrf.mxu0  ;;  %v612_v57 = vpop.f32.mrf.mxu1 }
  0xc3   : > { %v2298_v59 = vadd.f32 %v612_v57, %v579_v54  ;;  %v650_v61 = vpop.f32.mrf.mxu2  ;;  %v583_v60 = vadd.f32 %v582_v56, %v543_v63 }
  0xc4   : > { %v701_v62 = vadd.f32 %v700_v55, %v650_v61 }
  0xc5   : > { %1238 = vmatmul.f32.gmra.mxu0 %v2224_v5  ;;  %1272 = vmatmul.f32.vlgmr.msrb.gmra.mxu1 %v2212_v1  ;;  %v549_v1 = vadd.f32 %v548_v39, %v508_v8 }
  0xc6   : > { %1352 = vmatmul.f32.gmra.mxu3 %v2214_v2 }
  0xc7   : > { %1318 = vmatmul.f32.gmra.mxu2 %v2214_v2 }
  0xc9   : > { %v704_v3 = vpop.f32.mrf.mxu3 }
  0xca   : > { %v586_v4 = vpop.f32.mrf.mxu0  ;;  %v616_v6 = vpop.f32.mrf.mxu1 }
  0xcb   : > { %v2304_v11 = vadd.f32 %v616_v6, %v583_v60  ;;  %v658_v12 = vpop.f32.mrf.mxu2  ;;  %v587_v5 = vadd.f32 %v586_v4, %v549_v1 }
  0xcc   : > { %v705_v15 = vadd.f32 %v704_v3, %v658_v12 }
  0xcd   : > { %1243 = vmatmul.f32.gmra.mxu0 %v2241_v13  ;;  %1278 = vmatmul.f32.gmra.mxu1 %v2230_v9 }
  0xce   : > { %1356 = vmatmul.f32.gmra.mxu3 %v2232_v10 }
  0xcf   : > { %1322 = vmatmul.f32.gmra.mxu2 %v2232_v10 }
  0xd1   : > { %v708_v2 = vpop.f32.mrf.mxu3 }
  0xd2   : > { %v590_v16 = vpop.f32.mrf.mxu0  ;;  %v620_v19 = vpop.f32.mrf.mxu1 }
  0xd3   : > { %v591_v21 = vadd.f32 %v590_v16, %v555_v53  ;;  %v2310_v22 = vadd.f32 %v620_v19, %v587_v5  ;;  %v666_v23 = vpop.f32.mrf.mxu2 }
  0xd4   : > { %v709_v25 = vadd.f32 %v708_v2, %v666_v23 }
  0xd5   : > { %1248 = vmatmul.f32.gmra.mxu0 %v2255_v20  ;;  %1284 = vmatmul.f32.gmra.mxu1 %v2247_v17 }
  0xd6   : > { %1360 = vmatmul.f32.gmra.mxu3 %v2249_v18 }
  0xd7   : > { %1326 = vmatmul.f32.gmra.mxu2 %v2249_v18 }
  0xd9   : > { %v712_v9 = vpop.f32.mrf.mxu3 }
  0xda   : > { %v624_v13 = vpop.f32.mrf.mxu1  ;;  %v736_v10 = vpop.f32.mrf.mxu0 }
  0xdb   : > { %v2316_v26 = vadd.f32 %v624_v13, %v591_v21  ;;  %v674_v27 = vpop.f32.mrf.mxu2  ;;  %v737_v28 = vadd.f32 %v736_v10, %v701_v62 }
  0xdc   : > { %v713_v29 = vadd.f32 %v712_v9, %v674_v27 }
  0xdd   : > { %1290 = vmatmul.f32.gmra.mxu1 %v2263_v24 }
  0xe1   : > { %v851_v30 = vpop.f32.mrf.mxu3 }
  0xe2   : > { %v741_v31 = vpop.f32.mrf.mxu0  ;;  %v775_v32 = vpop.f32.mrf.mxu1 }
  0xe3   : > { %v742_v20 = vadd.f32 %v741_v31, %v705_v15  ;;  %v776_v33 = vadd.f32 %v775_v32, %v737_v28  ;;  %v817_v17 = vpop.f32.mrf.mxu2  ;;  %v2336_v31 = vpop.permute.xlu1 %1375 }
  0xe5   : > { %v818_v34 = vadd.f32 %v817_v17, %v776_v33 }
  0xe7   : > { %v2319_v35 = vadd.f32 %v851_v30, %v818_v34 }
  0xe9   : > { %v855_v18 = vpop.f32.mrf.mxu3 }
  0xea   : > { %v746_v36 = vpop.f32.mrf.mxu0  ;;  %v781_v37 = vpop.f32.mrf.mxu1 }
  0xeb   : > { %v747_v38 = vadd.f32 %v746_v36, %v709_v25  ;;  %v782_v39 = vadd.f32 %v781_v37, %v742_v20  ;;  %v821_v40 = vpop.f32.mrf.mxu2 }
  0xed   : > { %v822_v41 = vadd.f32 %v821_v40, %v782_v39 }
  0xef   : > { %v2321_v42 = vadd.f32 %v855_v18, %v822_v41 }
  0xf1   : > { %v859_v43 = vpop.f32.mrf.mxu3 }
  0xf2   : > { %v751_v24 = vpop.f32.mrf.mxu0  ;;  %v787_v44 = vpop.f32.mrf.mxu1 }
  0xf3   : > { %v752_v45 = vadd.f32 %v751_v24, %v713_v29  ;;  %v788_v46 = vadd.f32 %v787_v44, %v747_v38  ;;  %v825_v47 = vpop.f32.mrf.mxu2  ;;  %v2334_v29 = vpop.permute.xlu0 %1385 }
  0xf5   : > { %v826_v48 = vadd.f32 %v825_v47, %v788_v46 }
  0xf7   : > { %v2323_v49 = vadd.f32 %v859_v43, %v826_v48 }
  0xf9   : > { %v863_v50 = vpop.f32.mrf.mxu3 }
  0xfa   : > { %v793_v51 = vpop.f32.mrf.mxu1  ;;  %v909_v52 = vpop.f32.mrf.mxu0 }
  0xfb   : > { %v794_v53 = vadd.f32 %v793_v51, %v752_v45  ;;  %v829_v54 = vpop.f32.mrf.mxu2  ;;  %v910_v9 = vadd.f32 %v909_v52, %v2298_v59  ;;  %v2341_v43 = vpop.permute.xlu0 %1380 }
  0xfc   : > { %v2347_v51 = vpop.permute.xlu1 %1370 }
  0xfd   : > { %v830_v55 = vadd.f32 %v829_v54, %v794_v53  ;;  %v1404_v53 = vld [vmem:[%s2442_s5] sm:$0x1] }
  0xff   : > { %v2325_v56 = vadd.f32 %v863_v50, %v830_v55 }
 0x101   : > { %v1034_v57 = vpop.f32.mrf.mxu3 }
 0x102   : > { %v917_v58 = vpop.f32.mrf.mxu0  ;;  %v959_v61 = vpop.f32.mrf.mxu1 }
 0x103   : > { %v995_v62 = vpop.f32.mrf.mxu2  ;;  %v918_v23 = vadd.f32 %v917_v58, %v2304_v11  ;;  %v960_v27 = vadd.f32 %v959_v61, %v910_v9  ;;  %v1414_v58 = vsel %vm1412_vm2, %v1404_v53, 0 }
 0x105   : > { %v996_v17 = vadd.f32 %v995_v62, %v960_v27 }
 0x107   : > { %v1035_v36 = vadd.f32 %v1034_v57, %v996_v17 }
 0x109   : > { %v1040_v63 = vpop.f32.mrf.mxu3 }
 0x10a   : > { %v925_v0 = vpop.f32.mrf.mxu0  ;;  %v963_v60 = vpop.f32.mrf.mxu1 }
 0x10b   : > { %v1000_v3 = vpop.f32.mrf.mxu2  ;;  %v926_v13 = vadd.f32 %v925_v0, %v2310_v22  ;;  %v964_v10 = vadd.f32 %v963_v60, %v918_v23  ;;  %v2357_v0 = vand.u32 4294901760, %v1414_v58 }
 0x10d   : > { %v1001_v30 = vadd.f32 %v1000_v3, %v964_v10 }
 0x10f   : > { %v1041_v18 = vadd.f32 %v1040_v63, %v1001_v30 }
 0x111   : > { %v1046_v4 = vpop.f32.mrf.mxu3 }
 0x112   : > { %v933_v6 = vpop.f32.mrf.mxu0  ;;  %v967_v8 = vpop.f32.mrf.mxu1 }
 0x113   : > { %v1005_v12 = vpop.f32.mrf.mxu2  ;;  %v968_v28 = vadd.f32 %v967_v8, %v926_v13  ;;  %v934_v59 = vadd.f32 %v933_v6, %v2316_v26 }
 0x115   : > { %v1006_v11 = vadd.f32 %v1005_v12, %v968_v28 }
 0x117   : > { %v1047_v22 = vadd.f32 %v1046_v4, %v1006_v11 }
 0x119   : > { %v1052_v15 = vpop.f32.mrf.mxu3 }
 0x11a   : > { %v971_v1 = vpop.f32.mrf.mxu1  ;;  %v1076_v5 = vpop.f32.mrf.mxu0 }
 0x11b   : > { %v1010_v2 = vpop.f32.mrf.mxu2  ;;  %v972_v37 = vadd.f32 %v971_v1, %v934_v59  ;;  %v1077_v39 = vadd.f32 %v1076_v5, %v1035_v36  ;;  %v2367_v5 = vsub.f32 %v1414_v58, %v2357_v0 }
 0x11d   : > { %v1011_v46 = vadd.f32 %v1010_v2, %v972_v37  ;;  %v2376_v10 = vand.u32 4294901760, %v2367_v5 }
 0x11f   : > { %v1053_v54 = vadd.f32 %v1052_v15, %v1011_v46  ;;  %v1439_v36 = vsub.f32 %v2367_v5, %v2376_v10 }
 0x121   : > { %v2327_v16 = vpop.f32.mrf.mxu3 }
 0x122   : > { %v1080_v19 = vpop.f32.mrf.mxu0  ;;  %v1110_v21 = vpop.f32.mrf.mxu1 }
 0x123   : > { %v2330_v25 = vpop.f32.mrf.mxu2  ;;  %v1081_v38 = vadd.f32 %v1080_v19, %v1041_v18  ;;  %v1111_v47 = vadd.f32 %v1110_v21, %v1077_v39 }
 0x125   : > { %v1388_v55 = vadd.f32 %v2347_v51, %v1111_v47 }
 0x127   : > { %v1396_v4 = vmax.f32 %v1388_v55, 0.0 }
 0x129   : > { %v2338_v32 = vpop.f32.mrf.mxu3  ;;  %v2369_v2 = vand.u32 4294901760, %v1396_v4 }
 0x12a   : > { %v1084_v20 = vpop.f32.mrf.mxu0  ;;  %v1114_v33 = vpop.f32.mrf.mxu1 }
 0x12b   : > { %v1156_v34 = vpop.f32.mrf.mxu2  ;;  %v1085_v40 = vadd.f32 %v1084_v20, %v1047_v22  ;;  %v1115_v41 = vadd.f32 %v1114_v33, %v1081_v38  ;;  %v1476_v30 = vsub.f32 %v1396_v4, %v2369_v2  ;;  %v1149_v22 = vadd.f32 %v2330_v25, %v2319_v35 }
 0x12c   : > { %v1157_v11 = vadd.f32 %v1156_v34, %v2321_v42 }
 0x12d   : > { %v1390_v26 = vadd.f32 %v2336_v31, %v1115_v41  ;;  %v1477_v39 = vand.u32 4294901760, %v1476_v30  ;;  %v1199_v35 = vadd.f32 %v2327_v16, %v1149_v22 }
 0x12e   : > { %v1203_v42 = vadd.f32 %v2338_v32, %v1157_v11 }
 0x12f   : > { %v1398_v61 = vmax.f32 %v1390_v26, 0.0 }
 0x131   : > { %v2343_v24 = vpop.f32.mrf.mxu3  ;;  %v2363_v1 = vand.u32 4294901760, %v1398_v61 }
 0x132   : > { %v1088_v44 = vpop.f32.mrf.mxu0  ;;  %v1118_v45 = vpop.f32.mrf.mxu1 }
 0x133   : > { %v1119_v48 = vadd.f32 %v1118_v45, %v1085_v40  ;;  %v2345_v50 = vpop.f32.mrf.mxu2  ;;  %v1089_v62 = vadd.f32 %v1088_v44, %v1053_v54  ;;  %v1470_v13 = vsub.f32 %v1398_v61, %v2363_v1  ;;  %v2390_v44 = vand.u32 4294901760, %v1439_v36 }
 0x134   : > { %v1165_v45 = vadd.f32 %v2345_v50, %v2323_v49 }
 0x135   : > { %v1392_v52 = vadd.f32 %v2341_v43, %v1119_v48  ;;  %v1471_v59 = vand.u32 4294901760, %v1470_v13  ;;  %v1478_v48 = vsub.f32 %v1476_v30, %v1477_v39 }
 0x136   : > { %v1207_v49 = vadd.f32 %v2343_v24, %v1165_v45 }
 0x137   : > { %v1400_v57 = vmax.f32 %v1392_v52, 0.0  ;;  %v1472_v41 = vsub.f32 %v1470_v13, %v1471_v59  ;;  %v1479_v54 = vand.u32 4294901760, %v1478_v48 }
 0x139   : > { %v2355_v63 = vpop.f32.mrf.mxu3  ;;  %v2359_v6 = vand.u32 4294901760, %v1400_v57  ;;  %v1473_v16 = vand.u32 4294901760, %v1472_v41 }
 0x13a   : > { %v1122_v60 = vpop.f32.mrf.mxu1  ;;  %v1234_v3 = vpop.f32.mrf.mxu0 }
 0x13b   : > { %v1123_v8 = vadd.f32 %v1122_v60, %v1089_v62  ;;  %v2361_v12 = vpop.f32.mrf.mxu2  ;;  %v1464_v19 = vsub.f32 %v1400_v57, %v2359_v6  ;;  %v1235_v52 = vadd.f32 %v1234_v3, %v1199_v35 }
 0x13c   : > { %v1173_v62 = vadd.f32 %v2361_v12, %v2325_v56 }
 0x13d   : > { %v1394_v15 = vadd.f32 %v2334_v29, %v1123_v8  ;;  %v1465_v17 = vand.u32 4294901760, %v1464_v19 }
 0x13f   : > { %v1402_v21 = vmax.f32 %v1394_v15, 0.0  ;;  %v1466_v38 = vsub.f32 %v1464_v19, %v1465_v17 }
 0x141   : > { %v1428_v23 = vand.u32 4294901760, %v1402_v21  ;;  %v2372_v9 = vpop.f32.mrf.mxu3  ;;  %v1467_v47 = vand.u32 4294901760, %v1466_v38 }
 0x142   : > { %v1239_v27 = vpop.f32.mrf.mxu0  ;;  %v1273_v28 = vpop.f32.mrf.mxu1 }
 0x143   : > { %v1458_v20 = vsub.f32 %v1402_v21, %v1428_v23  ;;  %1429 = vmatpush.msra.mxu0 %v1428_v23  ;;  %1529 = vmatpush.msra.mxu3 %v1428_v23  ;;  %v1315_v33 = vpop.f32.mrf.mxu2  ;;  %v1240_v46 = vadd.f32 %v1239_v27, %v1203_v42  ;;  %v1274_v50 = vadd.f32 %v1273_v28, %v1235_v52 }
 0x145   : > { %1431 = vmatpush.msra.mxu0 %v2359_v6  ;;  %1500 = vmatpush.msra.mxu2 %v1458_v20  ;;  %v1459_v18 = vand.u32 4294901760, %v1458_v20  ;;  %v1316_v60 = vadd.f32 %v1315_v33, %v1274_v50 }
 0x146   : > { %1531 = vmatpush.msra.mxu3 %v2359_v6 }
 0x147   : > { %1433 = vmatpush.msra.mxu0 %v2363_v1  ;;  %1503 = vmatpush.msra.mxu2 %v1464_v19  ;;  %v1460_v37 = vsub.f32 %v1458_v20, %v1459_v18  ;;  %v1211_v19 = vadd.f32 %v2355_v63, %v1173_v62  ;;  %v1350_v21 = vadd.f32 %v2372_v9, %v1316_v60  ;;  %v1405_v9 = vld [vmem:[#allocation2] sm:$0x1] }
 0x148   : > { %1533 = vmatpush.msra.mxu3 %v2363_v1  ;;  %1408 = vperm.xlu2 %1992, %v1405_v9  }
 0x149   : > { %1435 = vmatpush.msra.mxu0 %v2369_v2  ;;  %1506 = vmatpush.msra.mxu2 %v1470_v13  ;;  %v1461_v34 = vand.u32 4294901760, %v1460_v37  ;;  %v1353_v40 = vpop.f32.mrf.mxu3  ;;  %v1389_v27 = vadd.f32 %v2347_v51, %v1350_v21 }
 0x14a   : > { %1535 = vmatpush.msra.mxu3 %v2369_v2  ;;  %v1279_v25 = vpop.f32.mrf.mxu1  ;;  %v1244_v26 = vpop.f32.mrf.mxu0  ;;  %1441 = vmatmul.f32.vlgmr.msra.gmra.mxu0 %v2390_v44 }
 0x14b   : > { %1558 = vmatpush.msrb.mxu0 %v1459_v18  ;;  %1462 = vmatpush.msra.mxu1 %v1461_v34  ;;  %v1319_v32 = vpop.f32.mrf.mxu2  ;;  %v1280_v53 = vadd.f32 %v1279_v25, %v1240_v46  ;;  %v1245_v55 = vadd.f32 %v1244_v26, %v1207_v49 }
 0x14c   : > { %1509 = vmatpush.msra.mxu2 %v1476_v30  ;;  %1539 = vmatmul.f32.vlgmr.msra.gmra.mxu3 %v2376_v10 }
 0x14d   : > { %1562 = vmatpush.msrb.mxu0 %v1465_v17  ;;  %1512 = vmatmul.f32.vlgmr.msra.gmra.mxu2 %v2367_v5  ;;  %v1320_v57 = vadd.f32 %v1319_v32, %v1280_v53  ;;  %v1397_v17 = vmax.f32 %v1389_v27, 0.0 }
 0x14e   : > { %1468 = vmatpush.msra.mxu1 %v1467_v47 }
 0x14f   : > { %1566 = vmatpush.msrb.mxu0 %v1471_v59  ;;  %v1354_v24 = vadd.f32 %v1353_v40, %v1320_v57 }
 0x150   : > { %1474 = vmatpush.msra.mxu1 %v1473_v16 }
 0x151   : > { %1570 = vmatpush.msrb.mxu0 %v1477_v39  ;;  %v1357_v61 = vpop.f32.mrf.mxu3  ;;  %v1391_v56 = vadd.f32 %v2336_v31, %v1354_v24 }
 0x152   : > { %1480 = vmatpush.msra.mxu1 %v1479_v54  ;;  %v1285_v58 = vpop.f32.mrf.mxu1  ;;  %1572 = vmatmul.f32.vlgmr.msrb.gmra.mxu0 %v2357_v0  ;;  %v1249_v15 = vpop.f32.mrf.mxu0 }
 0x153   : > { %v1286_v3 = vadd.f32 %v1285_v58, %v1245_v55  ;;  %v1323_v4 = vpop.f32.mrf.mxu2  ;;  %1482 = vmatmul.f32.vlgmr.msra.gmra.mxu1 %v2357_v0  ;;  %v1250_v12 = vadd.f32 %v1249_v15, %v1211_v19  ;;  %v1399_v63 = vmax.f32 %v1391_v56, 0.0 }
 0x154   : > { %1589 = vmatpush.msrb.mxu1 %v1428_v23 }
 0x155   : > { %v1324_v8 = vadd.f32 %v1323_v4, %v1286_v3  ;;  %v1617_v31 = vand.u32 4294901760, %v1399_v63 }
 0x156   : > { %1591 = vmatpush.msrb.mxu1 %v2359_v6 }
 0x157   : > { %v1358_v23 = vadd.f32 %v1357_v61, %v1324_v8  ;;  %v1655_v22 = vsub.f32 %v1399_v63, %v1617_v31 }
 0x158   : > { %1593 = vmatpush.msrb.mxu1 %v2363_v1 }
 0x159   : > { %v1393_v13 = vadd.f32 %v2341_v43, %v1358_v23  ;;  %v1361_v1 = vpop.f32.mrf.mxu3  ;;  %v1619_v43 = vand.u32 4294901760, %v1397_v17  ;;  %v1656_v34 = vand.u32 4294901760, %v1655_v22 }
 0x15a   : > { %1595 = vmatpush.msrb.mxu1 %v2369_v2  ;;  %v1291_v6 = vpop.f32.mrf.mxu1 }
 0x15b   : > { %v1401_v28 = vmax.f32 %v1393_v13, 0.0  ;;  %v1292_v30 = vadd.f32 %v1291_v6, %v1250_v12  ;;  %v1327_v20 = vpop.f32.mrf.mxu2  ;;  %1597 = vmatmul.f32.vlgmr.msrb.gmra.mxu1 %v2357_v0  ;;  %v1661_v38 = vsub.f32 %v1397_v17, %v1619_v43  ;;  %v1657_v25 = vsub.f32 %v1655_v22, %v1656_v34 }
 0x15d   : > { %v1328_v33 = vadd.f32 %v1327_v20, %v1292_v30  ;;  %v1615_v11 = vand.u32 4294901760, %v1401_v28  ;;  %v1658_v32 = vand.u32 4294901760, %v1657_v25 }
 0x15f   : > { %v1362_v2 = vadd.f32 %v1361_v1, %v1328_v33  ;;  %v1649_v36 = vsub.f32 %v1401_v28, %v1615_v11 }
 0x161   : > { %v1395_v18 = vadd.f32 %v2334_v29, %v1362_v2  ;;  %v1650_v39 = vand.u32 4294901760, %v1649_v36  ;;  %v1662_v29 = vand.u32 4294901760, %v1661_v38 }
 0x163   : > { %v1403_v59 = vmax.f32 %v1395_v18, 0.0  ;;  %v1651_v41 = vsub.f32 %v1649_v36, %v1650_v39  ;;  %v1663_v46 = vsub.f32 %v1661_v38, %v1662_v29 }
 0x165   : > { %v1613_v51 = vand.u32 4294901760, %v1403_v59  ;;  %v1652_v45 = vand.u32 4294901760, %v1651_v41  ;;  %v1664_v47 = vand.u32 4294901760, %v1663_v46 }
 0x167   : > { %v1643_v37 = vsub.f32 %v1403_v59, %v1613_v51  ;;  %1614 = vmatpush.msrb.mxu2 %v1613_v51  ;;  %1714 = vmatpush.msra.mxu1 %v1613_v51 }
 0x169   : > { %1616 = vmatpush.msrb.mxu2 %v1615_v11  ;;  %1685 = vmatpush.msra.mxu0 %v1643_v37  ;;  %v1644_v42 = vand.u32 4294901760, %v1643_v37 }
 0x16a   : > { %1716 = vmatpush.msra.mxu1 %v1615_v11 }
 0x16b   : > { %1618 = vmatpush.msrb.mxu2 %v1617_v31  ;;  %1688 = vmatpush.msra.mxu0 %v1649_v36  ;;  %v1645_v40 = vsub.f32 %v1643_v37, %v1644_v42 }
 0x16c   : > { %1718 = vmatpush.msra.mxu1 %v1617_v31 }
 0x16d   : > { %1620 = vmatpush.msrb.mxu2 %v1619_v43  ;;  %1691 = vmatpush.msra.mxu0 %v1655_v22  ;;  %v1646_v35 = vand.u32 4294901760, %v1645_v40 }
 0x16e   : > { %1720 = vmatpush.msra.mxu1 %v1619_v43  ;;  %1626 = vmatmul.f32.vlgmr.msrb.gmra.mxu2 %v2390_v44 }
 0x16f   : > { %1743 = vmatpush.msra.mxu2 %v1644_v42  ;;  %1647 = vmatpush.msrb.mxu3 %v1646_v35 }
 0x170   : > { %1694 = vmatpush.msra.mxu0 %v1661_v38  ;;  %1724 = vmatmul.f32.vlgmr.msra.gmra.mxu1 %v2376_v10 }
 0x171   : > { %1747 = vmatpush.msra.mxu2 %v1650_v39  ;;  %1697 = vmatmul.f32.vlgmr.msra.gmra.mxu0 %v2367_v5 }
 0x172   : > { %1653 = vmatpush.msrb.mxu3 %v1652_v45 }
 0x173   : > { %1751 = vmatpush.msra.mxu2 %v1656_v34 }
 0x174   : > { %1659 = vmatpush.msrb.mxu3 %v1658_v32 }
 0x175   : > { %1755 = vmatpush.msra.mxu2 %v1662_v29 }
 0x176   : > { %1665 = vmatpush.msrb.mxu3 %v1664_v47  ;;  %1757 = vmatmul.f32.vlgmr.msra.gmra.mxu2 %v2357_v0 }
 0x177   : > { %1667 = vmatmul.f32.vlgmr.msrb.gmra.mxu3 %v2357_v0 }
 0x178   : > { %1774 = vmatpush.msra.mxu3 %v1613_v51 }
 0x17a   : > { %1776 = vmatpush.msra.mxu3 %v1615_v11 }
 0x17c   : > { %1778 = vmatpush.msra.mxu3 %v1617_v31 }
 0x17e   : > { %1780 = vmatpush.msra.mxu3 %v1619_v43 }
 0x17f   : > { %1782 = vmatmul.f32.vlgmr.msra.gmra.mxu3 %v2357_v0 }
 0x1a2   : > { %v1409_v5 = vpop.permute.xlu2 %1408 }
 0x1a3   : > { %v1411_v48 = vperm.slane %v1409_v5, 0 }
 0x1c7   : > { %v1442_v44 = vpop.f32.mrf.mxu0 }
 0x1c8   : > { %v1443_v26 = vadd.f32 %v1442_v44, %v1411_v48 }
 0x1cf   : > { %v1540_v49 = vpop.f32.mrf.mxu3  ;;  %v1573_v54 = vpop.f32.mrf.mxu0 }
 0x1d0   : > { %v1483_v52 = vpop.f32.mrf.mxu1  ;;  %v1513_v53 = vpop.f32.mrf.mxu2 }
 0x1d1   : > { %v1484_v10 = vadd.f32 %v1483_v52, %v1443_v26 }
 0x1d3   : > { %v1514_v16 = vadd.f32 %v1513_v53, %v1484_v10 }
 0x1d5   : > { %v1541_v50 = vadd.f32 %v1540_v49, %v1514_v16 }
 0x1d7   : > { %v1574_v55 = vadd.f32 %v1573_v54, %v1541_v50 }
 0x1d8   : > { %v1598_v57 = vpop.f32.mrf.mxu1 }
 0x1d9   : > { %v1599_v58 = vadd.f32 %v1598_v57, %v1574_v55 }
 0x1db   : > { %v1786_v61 = vsub.f32 0.0, %v1599_v58 }
 0x1dd   : > { %v1788_v62 = vmul.f32 1.442695, %v1786_v61 }
 0x1df   : > { %1993 = vpow2.f32 %v1788_v62 }
 0x1e5   : > { %v1994_v15 = vpop.eup %1993 }
 0x1e6   : > { %v1792_v56 = vadd.f32 1.0, %v1994_v15 }
 0x1e8   : > { %1995 = vrcp.f32 %v1792_v56  ;;  %vm1799_vm3 = vweird.f32 %v1792_v56  ;;  %v1803_v11 = vand.u32 2147483647, %v1792_v56  ;;  %v1805_v2 = vand.u32 2147483648, %v1792_v56 }
 0x1ea   : > { %vm1804_vm6 = vcmp.eq.f32.partialorder %v1803_v11, 8.507059e+37  ;;  %v1806_v59 = vor.u32 1.1754944e-38, %v1805_v2 }
 0x1ed   : > { %v1725_v8 = vpop.f32.mrf.mxu1 }
 0x1ee   : > { %v1698_v4 = vpop.f32.mrf.mxu0  ;;  %v1996_v30 = vpop.eup %1995 }
 0x1ef   : > { %v1795_v20 = vmul.f32 %v1996_v30, %v1792_v56  ;;  %vm1800_vm4 = vweird.f32 %v1996_v30 }
 0x1f0   : > { %vm1801_vm5 = vmor %vm1799_vm3, %vm1800_vm4 }
 0x1f1   : > { %v1627_v60 = vpop.f32.mrf.mxu2  ;;  %v1796_v33 = vsub.f32 1.0, %v1795_v20 }
 0x1f2   : > { %v1628_v3 = vadd.f32 %v1627_v60, %v1411_v48 }
 0x1f3   : > { %v1797_v9 = vmul.f32 %v1996_v30, %v1796_v33 }
 0x1f5   : > { %v1798_v31 = vadd.f32 %v1996_v30, %v1797_v9 }
 0x1f7   : > { %v1802_v51 = vsel %vm1801_vm5, %v1996_v30, %v1798_v31 }
 0x1f8   : > { %v1807_v39 = vsel %vm1804_vm6, %v1806_v59, %v1802_v51 }
 0x1f9   : > { %v1758_v21 = vpop.f32.mrf.mxu2  ;;  %v1832_v41 = vsub.f32 1.0, %v1807_v39  ;;  %v1824_v25 = vperm.slane %v1807_v39, 0 }
 0x1fa   : > { %v1668_v0 = vpop.f32.mrf.mxu3 }
 0x1fb   : > { %v1669_v24 = vadd.f32 %v1668_v0, %v1628_v3  ;;  %v1834_v32 = vperm.slane %v1832_v41, 0 }
 0x1fd   : > { %v1699_v19 = vadd.f32 %v1698_v4, %v1669_v24 }
 0x1ff   : > { %v1726_v23 = vadd.f32 %v1725_v8, %v1699_v19 }
 0x201   : > { %v1759_v12 = vadd.f32 %v1758_v21, %v1726_v23 }
 0x202   : > { %v1783_v13 = vpop.f32.mrf.mxu3 }
 0x203   : > { %v1784_v6 = vadd.f32 %v1783_v13, %v1759_v12 }
 0x205   : > { %v1787_v27 = vsub.f32 0.0, %v1784_v6 }
 0x207   : > { %v1790_v28 = vmul.f32 1.442695, %v1787_v27 }
 0x209   : > { %1997 = vpow2.f32 %v1790_v28 }
 0x20f   : > { %v1998_v1 = vpop.eup %1997 }
 0x210   : > { %v1793_v63 = vadd.f32 1.0, %v1998_v1 }
 0x212   : > { %1999 = vrcp.f32 %v1793_v63  ;;  %v1820_v36 = vand.u32 2147483648, %v1793_v63  ;;  %v1818_v37 = vand.u32 2147483647, %v1793_v63  ;;  %vm1814_vm8 = vweird.f32 %v1793_v63 }
 0x214   : > { %v1821_v42 = vor.u32 1.1754944e-38, %v1820_v36  ;;  %vm1819_vm10 = vcmp.eq.f32.partialorder %v1818_v37, 8.507059e+37 }
 0x218   : > { %v2000_v17 = vpop.eup %1999 }
 0x219   : > { %v1810_v18 = vmul.f32 %v2000_v17, %v1793_v63  ;;  %vm1815_vm7 = vweird.f32 %v2000_v17 }
 0x21a   : > { %vm1816_vm9 = vmor %vm1814_vm8, %vm1815_vm7 }
 0x21b   : > { %v1811_v43 = vsub.f32 1.0, %v1810_v18 }
 0x21d   : > { %v1812_v22 = vmul.f32 %v2000_v17, %v1811_v43 }
 0x21f   : > { %v1813_v38 = vadd.f32 %v2000_v17, %v1812_v22 }
 0x221   : > { %v1817_v34 = vsel %vm1816_vm9, %v2000_v17, %v1813_v38 }
 0x222   : > { %v1822_v40 = vsel %vm1819_vm10, %v1821_v42, %v1817_v34 }
 0x223   : > { %v1825_v29 = vperm.slane %v1822_v40, 0  ;;  %v1833_v35 = vsub.f32 1.0, %v1822_v40 }
 0x225   : > { %v1828_v45 = vrot.slane %v1825_v29, 4  ;;  %v1835_v46 = vperm.slane %v1833_v35, 0 }
 0x227   : > { %v1829_v47 = vsel %vm383_vm1, %v1824_v25, %v1828_v45  ;;  %v1838_v5 = vrot.slane %v1835_v46, 4 }
 0x228   : > { %v1831_v44 = vmul.f32 %v1829_v47, %v2127_v14 }
 0x229   : > { %v1839_v48 = vsel %vm383_vm1, %v1834_v32, %v1838_v5 }
 0x22a   : > { %v1841_v26 = vmul.f32 %v1839_v48, %v2106_v7 }
 0x22c   : > { %v1842_v52 = vadd.f32 %v1841_v26, %v1831_v44 }
 0x22e   : > { %1843 = vst [vmem:[%s354_s21] sm:$0xff] %v1842_v52 }
 0x22f PF: > { %s19_s28 = sadd.s32 1, %s2023_s28   ;;  %s2445_s26 = smov %s2019_s27 }
 0x230   : > { %p16_p5 = scmp.ge.s32.totalorder %s19_s28, 4   ;;  %s2446_s27 = smov %s2448_s6 }
 0x232   :  { %18 = sbr.rel (!%p16_p5) target bundleno = 3 (0x3), region = 81 }

</bundles_post_ra>
